<compile_context>
chip_gen: v5e
topology: v5e:2x2
jax: 0.10.0
libtpu: 0.0.40
codegen_flags: <defaults>
</compile_context>

<pallas_src>
import jax
import jax.numpy as jnp
from jax.experimental import pallas as pl
from jax.experimental.pallas import tpu as pltpu

TAU = 2.0
INV_TAU = 1.0 / TAU          # exact (0.5)
FIRING_THRES = 0.5


def _make_encoder_kernel(has_gate: bool):
    """Build the fused encoder kernel (specialized on whether a gate exists)."""

    def kernel(*refs):
        if has_gate:
            x_ref, w1_ref, wout_ref, gate_ref, ch_ref, com_ref = refs
        else:
            x_ref, w1_ref, wout_ref, ch_ref, com_ref = refs
            gate_ref = None

        Bb, T, F = x_ref.shape
        H = w1_ref.shape[1]
        O = wout_ref.shape[1]

        # ---- fc1: one MXU pass with M = Bb*T (hoisted out of the time loop) ----
        x2 = x_ref[...].reshape(Bb * T, F)
        h = jnp.dot(x2, w1_ref[...], preferred_element_type=jnp.float32)
        h = h.reshape(Bb, T, H)

        gate = gate_ref[...] if has_gate else None

        # ---- LIF1 + gate: element-wise scan over T (static unroll, VPU only) ----
        v1 = jnp.zeros((Bb, H), jnp.float32)
        for t in range(T):
            v1 = v1 + (h[:, t, :] - v1) * INV_TAU
            s1 = (v1 >= FIRING_THRES).astype(jnp.float32)
            v1 = v1 * (1.0 - s1)                     # hard reset to 0
            if has_gate:
                s1 = s1 * gate
            ch_ref[:, t, :] = s1

        # ---- fc_out: second single MXU pass over all timesteps at once ----
        spk1 = ch_ref[...].reshape(Bb * T, H)
        o = jnp.dot(spk1, wout_ref[...], preferred_element_type=jnp.float32)
        o = o.reshape(Bb, T, O)

        # ---- LIF2: element-wise scan over T ----
        v2 = jnp.zeros((Bb, O), jnp.float32)
        for t in range(T):
            v2 = v2 + (o[:, t, :] - v2) * INV_TAU
            s2 = (v2 >= FIRING_THRES).astype(jnp.float32)
            v2 = v2 * (1.0 - s2)
            com_ref[:, t, :] = s2

    return kernel


def encoder_forward(x, w1, w_out, gate=None):
    """x: [B, T, F] float32 (batch-major, as PyTorch).  w1: [F, H], w_out: [H, 2L]
    (pre-transposed nn.Linear weights).  gate: None or broadcastable to [B, H].
    Returns (com_spk [B,T,2L], ch_spk [B,T,H], sc_spk [B,T,F])."""
    B, T, F = x.shape
    H = w1.shape[1]
    O = w_out.shape[1]

    x = x.astype(jnp.float32)
    has_gate = gate is not None

    # Batch tile: largest "nice" divisor of B; batch rows are independent so
    # the grid axis is purely parallel (megacore sharding on v7x).
    B_blk = B
    for cand in (512, 256, 128, 64, 32, 16, 8):
        if B % cand == 0:
            B_blk = cand
            break
    grid = (B // B_blk,)

    in_specs = [
        pl.BlockSpec((B_blk, T, F), lambda b: (b, 0, 0)),   # x (batch tile)
        pl.BlockSpec((F, H), lambda b: (0, 0)),             # w1 (resident)
        pl.BlockSpec((H, O), lambda b: (0, 0)),             # w_out (resident)
    ]
    args = [x, w1.astype(jnp.float32), w_out.astype(jnp.float32)]
    if has_gate:
        gate_arr = jnp.broadcast_to(gate, (B, H)).astype(jnp.float32)
        in_specs.append(pl.BlockSpec((B_blk, H), lambda b: (b, 0)))
        args.append(gate_arr)

    out_specs = [
        pl.BlockSpec((B_blk, T, H), lambda b: (b, 0, 0)),   # ch_spk
        pl.BlockSpec((B_blk, T, O), lambda b: (b, 0, 0)),   # com_spk
    ]

    ch_spk, com_spk = pl.pallas_call(
        _make_encoder_kernel(has_gate),
        out_shape=(
            jax.ShapeDtypeStruct((B, T, H), jnp.float32),
            jax.ShapeDtypeStruct((B, T, O), jnp.float32),
        ),
        grid_spec=pltpu.PrefetchScalarGridSpec(
            num_scalar_prefetch=0,
            grid=grid,
            in_specs=in_specs,
            out_specs=out_specs,
        ),
        compiler_params=pltpu.CompilerParams(
            dimension_semantics=("parallel",),               # batch tiles independent
        ),
    )(*args)

    sc_spk = x
    return com_spk, ch_spk, sc_spk


def _reference_forward(x, w1, w_out, gate=None):
    """Pure-JAX reference of the same semantics (for sanity checking)."""
    B, T, F = x.shape
    H = w1.shape[1]
    O = w_out.shape[1]
    g = None if gate is None else jnp.broadcast_to(gate, (B, H)).astype(jnp.float32)
    v1 = jnp.zeros((B, H))
    v2 = jnp.zeros((B, O))
    ch, com = [], []
    for t in range(T):
        h = x[:, t] @ w1
        v1 = v1 + (h - v1) / TAU
        s1 = (v1 >= FIRING_THRES).astype(jnp.float32)
        v1 = v1 * (1.0 - s1)
        if g is not None:
            s1 = s1 * g
        ch.append(s1)
        o = s1 @ w_out
        v2 = v2 + (o - v2) / TAU
        s2 = (v2 >= FIRING_THRES).astype(jnp.float32)
        v2 = v2 * (1.0 - s2)
        com.append(s2)
    return jnp.stack(com, axis=1), jnp.stack(ch, axis=1), x


if __name__ == "__main__":
    # Module hyper-params (small, consistent with __init__):
    #   channels=4, K=1  -> feature dim F = channels*4*4//K = 64
    #   hidden_num=32, block_length=8 -> output dim = 16
    channels = 4
    K = 1
    hidden_num = 32
    block_length = 8

    B, T = 2, 4
    F = channels * 4 * 4 // K          # 64
    H = hidden_num                     # 32
    O = block_length * 2               # 16

    key = jax.random.PRNGKey(0)
    k_x, k_w1, k_w2, k_g = jax.random.split(key, 4)

    # use_feature=True -> x IS the (spike) feature tensor [B, T, F]
    x = jax.random.bernoulli(k_x, p=0.5, shape=(B, T, F)).astype(jnp.float32)

    # nn.Linear default init: U(-1/sqrt(fan_in), 1/sqrt(fan_in)); stored here
    # already transposed to (in, out) for row-major matmul in the kernel.
    bound1 = 1.0 / jnp.sqrt(F)
    bound2 = 1.0 / jnp.sqrt(H)
    w1 = jax.random.uniform(k_w1, (F, H), minval=-bound1, maxval=bound1,
                            dtype=jnp.float32)
    w_out = jax.random.uniform(k_w2, (H, O), minval=-bound2, maxval=bound2,
                               dtype=jnp.float32)

    # --- gate=None path (module default) ---
    com_spk, ch_spk, sc_spk = encoder_forward(x, w1, w_out, gate=None)
    jax.block_until_ready((com_spk, ch_spk, sc_spk))

    com_ref, ch_ref, sc_ref = _reference_forward(x, w1, w_out, gate=None)
    assert com_spk.shape == (B, T, O)
    assert ch_spk.shape == (B, T, H)
    assert sc_spk.shape == (B, T, F)
    assert jnp.allclose(com_spk, com_ref, atol=1e-5)
    assert jnp.allclose(ch_spk, ch_ref, atol=1e-5)
    assert jnp.allclose(sc_spk, sc_ref)

    # --- gated path (exercises the specialized gate kernel) ---
    gate = jax.random.bernoulli(k_g, p=0.5, shape=(B, H)).astype(jnp.float32)
    com_g, ch_g, _ = encoder_forward(x, w1, w_out, gate=gate)
    jax.block_until_ready((com_g, ch_g))
    com_gr, ch_gr, _ = _reference_forward(x, w1, w_out, gate=gate)
    assert jnp.allclose(com_g, com_gr, atol=1e-5)
    assert jnp.allclose(ch_g, ch_gr, atol=1e-5)

    print("KERNEL_OK")
</pallas_src>

<mosaic_0001>
module attributes {stable_mosaic.version = 11 : i64} {
  func.func @kernel(%arg0: i32, %arg1: memref<2x4x64xf32, #tpu.memory_space<vmem>>, %arg2: memref<64x32xf32, #tpu.memory_space<vmem>>, %arg3: memref<32x16xf32, #tpu.memory_space<vmem>>, %arg4: memref<2x4x32xf32, #tpu.memory_space<vmem>>, %arg5: memref<2x4x16xf32, #tpu.memory_space<vmem>>) attributes {dimension_semantics = [#tpu.dimension_semantics<parallel>], iteration_bounds = array<i64: 1>, scalar_prefetch = 0 : i64, scratch_operands = 0 : i64, tpu.core_type = #tpu.core_type<tc>, window_params = [{transform_indices = @transform_0, window_bounds = array<i64: 2, 4, 64>}, {pipeline_mode = #tpu.pipeline_mode<synchronous>, transform_indices = @transform_1, window_bounds = array<i64: 64, 32>}, {pipeline_mode = #tpu.pipeline_mode<synchronous>, transform_indices = @transform_2, window_bounds = array<i64: 32, 16>}, {transform_indices = @transform_3, window_bounds = array<i64: 2, 4, 32>}, {transform_indices = @transform_4, window_bounds = array<i64: 2, 4, 16>}]} {
    %c0 = arith.constant 0 : index
    %c0_0 = arith.constant 0 : index
    %c0_1 = arith.constant 0 : index
    %0 = vector.load %arg1[%c0, %c0_0, %c0_1] : memref<2x4x64xf32, #tpu.memory_space<vmem>>, vector<2x4x64xf32>
    %1 = vector.shape_cast %0 : vector<2x4x64xf32> to vector<8x64xf32>
    %c0_2 = arith.constant 0 : index
    %c0_3 = arith.constant 0 : index
    %2 = vector.load %arg2[%c0_2, %c0_3] : memref<64x32xf32, #tpu.memory_space<vmem>>, vector<64x32xf32>
    %cst = arith.constant dense<0.000000e+00> : vector<8x32xf32>
    %3 = tpu.matmul %1, %2, %cst {dimension_numbers = #tpu.dot_dimension_numbers<[1], [0], [0], [1], [0, 0, 1, 1], [], []>} : vector<8x64xf32>, vector<64x32xf32>, vector<8x32xf32> -> vector<8x32xf32>
    %4 = vector.shape_cast %3 : vector<8x32xf32> to vector<2x4x32xf32>
    %cst_4 = arith.constant 0.000000e+00 : f32
    %5 = vector.broadcast %cst_4 : f32 to vector<2x32xf32>
    %6 = vector.extract_strided_slice %4 {offsets = [0, 0, 0], sizes = [2, 1, 32], strides = [1, 1, 1]} : vector<2x4x32xf32> to vector<2x1x32xf32>
    %7 = vector.shape_cast %6 : vector<2x1x32xf32> to vector<2x32xf32>
    %8 = arith.subf %7, %5 : vector<2x32xf32>
    %cst_5 = arith.constant 5.000000e-01 : f32
    %9 = vector.broadcast %cst_5 : f32 to vector<2x32xf32>
    %10 = arith.mulf %8, %9 : vector<2x32xf32>
    %11 = arith.addf %5, %10 : vector<2x32xf32>
    %cst_6 = arith.constant 5.000000e-01 : f32
    %12 = vector.broadcast %cst_6 : f32 to vector<2x32xf32>
    %13 = arith.cmpf oge, %11, %12 : vector<2x32xf32>
    %14 = arith.extui %13 : vector<2x32xi1> to vector<2x32xi32>
    %15 = arith.sitofp %14 : vector<2x32xi32> to vector<2x32xf32>
    %cst_7 = arith.constant 1.000000e+00 : f32
    %16 = vector.broadcast %cst_7 : f32 to vector<2x32xf32>
    %17 = arith.subf %16, %15 : vector<2x32xf32>
    %18 = arith.mulf %11, %17 : vector<2x32xf32>
    %c0_8 = arith.constant 0 : index
    %c0_9 = arith.constant 0 : index
    %c0_10 = arith.constant 0 : index
    %19 = vector.load %arg4[%c0_8, %c0_9, %c0_10] : memref<2x4x32xf32, #tpu.memory_space<vmem>>, vector<2x1x32xf32>
    %20 = vector.shape_cast %19 : vector<2x1x32xf32> to vector<2x32xf32>
    %21 = vector.shape_cast %15 : vector<2x32xf32> to vector<2x1x32xf32>
    tpu.vector_store %arg4[%c0_8, %c0_9, %c0_10], %21 {strides = array<i32>} : memref<2x4x32xf32, #tpu.memory_space<vmem>>, vector<2x1x32xf32>,
    %22 = vector.extract_strided_slice %4 {offsets = [0, 1, 0], sizes = [2, 1, 32], strides = [1, 1, 1]} : vector<2x4x32xf32> to vector<2x1x32xf32>
    %23 = vector.shape_cast %22 : vector<2x1x32xf32> to vector<2x32xf32>
    %24 = arith.subf %23, %18 : vector<2x32xf32>
    %cst_11 = arith.constant 5.000000e-01 : f32
    %25 = vector.broadcast %cst_11 : f32 to vector<2x32xf32>
    %26 = arith.mulf %24, %25 : vector<2x32xf32>
    %27 = arith.addf %18, %26 : vector<2x32xf32>
    %cst_12 = arith.constant 5.000000e-01 : f32
    %28 = vector.broadcast %cst_12 : f32 to vector<2x32xf32>
    %29 = arith.cmpf oge, %27, %28 : vector<2x32xf32>
    %30 = arith.extui %29 : vector<2x32xi1> to vector<2x32xi32>
    %31 = arith.sitofp %30 : vector<2x32xi32> to vector<2x32xf32>
    %cst_13 = arith.constant 1.000000e+00 : f32
    %32 = vector.broadcast %cst_13 : f32 to vector<2x32xf32>
    %33 = arith.subf %32, %31 : vector<2x32xf32>
    %34 = arith.mulf %27, %33 : vector<2x32xf32>
    %c0_14 = arith.constant 0 : index
    %c1 = arith.constant 1 : index
    %c0_15 = arith.constant 0 : index
    %35 = vector.load %arg4[%c0_14, %c1, %c0_15] : memref<2x4x32xf32, #tpu.memory_space<vmem>>, vector<2x1x32xf32>
    %36 = vector.shape_cast %35 : vector<2x1x32xf32> to vector<2x32xf32>
    %37 = vector.shape_cast %31 : vector<2x32xf32> to vector<2x1x32xf32>
    tpu.vector_store %arg4[%c0_14, %c1, %c0_15], %37 {strides = array<i32>} : memref<2x4x32xf32, #tpu.memory_space<vmem>>, vector<2x1x32xf32>,
    %38 = vector.extract_strided_slice %4 {offsets = [0, 2, 0], sizes = [2, 1, 32], strides = [1, 1, 1]} : vector<2x4x32xf32> to vector<2x1x32xf32>
    %39 = vector.shape_cast %38 : vector<2x1x32xf32> to vector<2x32xf32>
    %40 = arith.subf %39, %34 : vector<2x32xf32>
    %cst_16 = arith.constant 5.000000e-01 : f32
    %41 = vector.broadcast %cst_16 : f32 to vector<2x32xf32>
    %42 = arith.mulf %40, %41 : vector<2x32xf32>
    %43 = arith.addf %34, %42 : vector<2x32xf32>
    %cst_17 = arith.constant 5.000000e-01 : f32
    %44 = vector.broadcast %cst_17 : f32 to vector<2x32xf32>
    %45 = arith.cmpf oge, %43, %44 : vector<2x32xf32>
    %46 = arith.extui %45 : vector<2x32xi1> to vector<2x32xi32>
    %47 = arith.sitofp %46 : vector<2x32xi32> to vector<2x32xf32>
    %cst_18 = arith.constant 1.000000e+00 : f32
    %48 = vector.broadcast %cst_18 : f32 to vector<2x32xf32>
    %49 = arith.subf %48, %47 : vector<2x32xf32>
    %50 = arith.mulf %43, %49 : vector<2x32xf32>
    %c0_19 = arith.constant 0 : index
    %c2 = arith.constant 2 : index
    %c0_20 = arith.constant 0 : index
    %51 = vector.load %arg4[%c0_19, %c2, %c0_20] : memref<2x4x32xf32, #tpu.memory_space<vmem>>, vector<2x1x32xf32>
    %52 = vector.shape_cast %51 : vector<2x1x32xf32> to vector<2x32xf32>
    %53 = vector.shape_cast %47 : vector<2x32xf32> to vector<2x1x32xf32>
    tpu.vector_store %arg4[%c0_19, %c2, %c0_20], %53 {strides = array<i32>} : memref<2x4x32xf32, #tpu.memory_space<vmem>>, vector<2x1x32xf32>,
    %54 = vector.extract_strided_slice %4 {offsets = [0, 3, 0], sizes = [2, 1, 32], strides = [1, 1, 1]} : vector<2x4x32xf32> to vector<2x1x32xf32>
    %55 = vector.shape_cast %54 : vector<2x1x32xf32> to vector<2x32xf32>
    %56 = arith.subf %55, %50 : vector<2x32xf32>
    %cst_21 = arith.constant 5.000000e-01 : f32
    %57 = vector.broadcast %cst_21 : f32 to vector<2x32xf32>
    %58 = arith.mulf %56, %57 : vector<2x32xf32>
    %59 = arith.addf %50, %58 : vector<2x32xf32>
    %cst_22 = arith.constant 5.000000e-01 : f32
    %60 = vector.broadcast %cst_22 : f32 to vector<2x32xf32>
    %61 = arith.cmpf oge, %59, %60 : vector<2x32xf32>
    %62 = arith.extui %61 : vector<2x32xi1> to vector<2x32xi32>
    %63 = arith.sitofp %62 : vector<2x32xi32> to vector<2x32xf32>
    %c0_23 = arith.constant 0 : index
    %c3 = arith.constant 3 : index
    %c0_24 = arith.constant 0 : index
    %64 = vector.load %arg4[%c0_23, %c3, %c0_24] : memref<2x4x32xf32, #tpu.memory_space<vmem>>, vector<2x1x32xf32>
    %65 = vector.shape_cast %64 : vector<2x1x32xf32> to vector<2x32xf32>
    %66 = vector.shape_cast %63 : vector<2x32xf32> to vector<2x1x32xf32>
    tpu.vector_store %arg4[%c0_23, %c3, %c0_24], %66 {strides = array<i32>} : memref<2x4x32xf32, #tpu.memory_space<vmem>>, vector<2x1x32xf32>,
    %c0_25 = arith.constant 0 : index
    %c0_26 = arith.constant 0 : index
    %c0_27 = arith.constant 0 : index
    %67 = vector.load %arg4[%c0_25, %c0_26, %c0_27] : memref<2x4x32xf32, #tpu.memory_space<vmem>>, vector<2x4x32xf32>
    %68 = vector.shape_cast %67 : vector<2x4x32xf32> to vector<8x32xf32>
    %c0_28 = arith.constant 0 : index
    %c0_29 = arith.constant 0 : index
    %69 = vector.load %arg3[%c0_28, %c0_29] : memref<32x16xf32, #tpu.memory_space<vmem>>, vector<32x16xf32>
    %cst_30 = arith.constant dense<0.000000e+00> : vector<8x16xf32>
    %70 = tpu.matmul %68, %69, %cst_30 {dimension_numbers = #tpu.dot_dimension_numbers<[1], [0], [0], [1], [0, 0, 1, 1], [], []>} : vector<8x32xf32>, vector<32x16xf32>, vector<8x16xf32> -> vector<8x16xf32>
    %71 = vector.shape_cast %70 : vector<8x16xf32> to vector<2x4x16xf32>
    %cst_31 = arith.constant 0.000000e+00 : f32
    %72 = vector.broadcast %cst_31 : f32 to vector<2x16xf32>
    %73 = vector.extract_strided_slice %71 {offsets = [0, 0, 0], sizes = [2, 1, 16], strides = [1, 1, 1]} : vector<2x4x16xf32> to vector<2x1x16xf32>
    %74 = vector.shape_cast %73 : vector<2x1x16xf32> to vector<2x16xf32>
    %75 = arith.subf %74, %72 : vector<2x16xf32>
    %cst_32 = arith.constant 5.000000e-01 : f32
    %76 = vector.broadcast %cst_32 : f32 to vector<2x16xf32>
    %77 = arith.mulf %75, %76 : vector<2x16xf32>
    %78 = arith.addf %72, %77 : vector<2x16xf32>
    %cst_33 = arith.constant 5.000000e-01 : f32
    %79 = vector.broadcast %cst_33 : f32 to vector<2x16xf32>
    %80 = arith.cmpf oge, %78, %79 : vector<2x16xf32>
    %81 = arith.extui %80 : vector<2x16xi1> to vector<2x16xi32>
    %82 = arith.sitofp %81 : vector<2x16xi32> to vector<2x16xf32>
    %cst_34 = arith.constant 1.000000e+00 : f32
    %83 = vector.broadcast %cst_34 : f32 to vector<2x16xf32>
    %84 = arith.subf %83, %82 : vector<2x16xf32>
    %85 = arith.mulf %78, %84 : vector<2x16xf32>
    %c0_35 = arith.constant 0 : index
    %c0_36 = arith.constant 0 : index
    %c0_37 = arith.constant 0 : index
    %86 = vector.load %arg5[%c0_35, %c0_36, %c0_37] : memref<2x4x16xf32, #tpu.memory_space<vmem>>, vector<2x1x16xf32>
    %87 = vector.shape_cast %86 : vector<2x1x16xf32> to vector<2x16xf32>
    %88 = vector.shape_cast %82 : vector<2x16xf32> to vector<2x1x16xf32>
    tpu.vector_store %arg5[%c0_35, %c0_36, %c0_37], %88 {strides = array<i32>} : memref<2x4x16xf32, #tpu.memory_space<vmem>>, vector<2x1x16xf32>,
    %89 = vector.extract_strided_slice %71 {offsets = [0, 1, 0], sizes = [2, 1, 16], strides = [1, 1, 1]} : vector<2x4x16xf32> to vector<2x1x16xf32>
    %90 = vector.shape_cast %89 : vector<2x1x16xf32> to vector<2x16xf32>
    %91 = arith.subf %90, %85 : vector<2x16xf32>
    %cst_38 = arith.constant 5.000000e-01 : f32
    %92 = vector.broadcast %cst_38 : f32 to vector<2x16xf32>
    %93 = arith.mulf %91, %92 : vector<2x16xf32>
    %94 = arith.addf %85, %93 : vector<2x16xf32>
    %cst_39 = arith.constant 5.000000e-01 : f32
    %95 = vector.broadcast %cst_39 : f32 to vector<2x16xf32>
    %96 = arith.cmpf oge, %94, %95 : vector<2x16xf32>
    %97 = arith.extui %96 : vector<2x16xi1> to vector<2x16xi32>
    %98 = arith.sitofp %97 : vector<2x16xi32> to vector<2x16xf32>
    %cst_40 = arith.constant 1.000000e+00 : f32
    %99 = vector.broadcast %cst_40 : f32 to vector<2x16xf32>
    %100 = arith.subf %99, %98 : vector<2x16xf32>
    %101 = arith.mulf %94, %100 : vector<2x16xf32>
    %c0_41 = arith.constant 0 : index
    %c1_42 = arith.constant 1 : index
    %c0_43 = arith.constant 0 : index
    %102 = vector.load %arg5[%c0_41, %c1_42, %c0_43] : memref<2x4x16xf32, #tpu.memory_space<vmem>>, vector<2x1x16xf32>
    %103 = vector.shape_cast %102 : vector<2x1x16xf32> to vector<2x16xf32>
    %104 = vector.shape_cast %98 : vector<2x16xf32> to vector<2x1x16xf32>
    tpu.vector_store %arg5[%c0_41, %c1_42, %c0_43], %104 {strides = array<i32>} : memref<2x4x16xf32, #tpu.memory_space<vmem>>, vector<2x1x16xf32>,
    %105 = vector.extract_strided_slice %71 {offsets = [0, 2, 0], sizes = [2, 1, 16], strides = [1, 1, 1]} : vector<2x4x16xf32> to vector<2x1x16xf32>
    %106 = vector.shape_cast %105 : vector<2x1x16xf32> to vector<2x16xf32>
    %107 = arith.subf %106, %101 : vector<2x16xf32>
    %cst_44 = arith.constant 5.000000e-01 : f32
    %108 = vector.broadcast %cst_44 : f32 to vector<2x16xf32>
    %109 = arith.mulf %107, %108 : vector<2x16xf32>
    %110 = arith.addf %101, %109 : vector<2x16xf32>
    %cst_45 = arith.constant 5.000000e-01 : f32
    %111 = vector.broadcast %cst_45 : f32 to vector<2x16xf32>
    %112 = arith.cmpf oge, %110, %111 : vector<2x16xf32>
    %113 = arith.extui %112 : vector<2x16xi1> to vector<2x16xi32>
    %114 = arith.sitofp %113 : vector<2x16xi32> to vector<2x16xf32>
    %cst_46 = arith.constant 1.000000e+00 : f32
    %115 = vector.broadcast %cst_46 : f32 to vector<2x16xf32>
    %116 = arith.subf %115, %114 : vector<2x16xf32>
    %117 = arith.mulf %110, %116 : vector<2x16xf32>
    %c0_47 = arith.constant 0 : index
    %c2_48 = arith.constant 2 : index
    %c0_49 = arith.constant 0 : index
    %118 = vector.load %arg5[%c0_47, %c2_48, %c0_49] : memref<2x4x16xf32, #tpu.memory_space<vmem>>, vector<2x1x16xf32>
    %119 = vector.shape_cast %118 : vector<2x1x16xf32> to vector<2x16xf32>
    %120 = vector.shape_cast %114 : vector<2x16xf32> to vector<2x1x16xf32>
    tpu.vector_store %arg5[%c0_47, %c2_48, %c0_49], %120 {strides = array<i32>} : memref<2x4x16xf32, #tpu.memory_space<vmem>>, vector<2x1x16xf32>,
    %121 = vector.extract_strided_slice %71 {offsets = [0, 3, 0], sizes = [2, 1, 16], strides = [1, 1, 1]} : vector<2x4x16xf32> to vector<2x1x16xf32>
    %122 = vector.shape_cast %121 : vector<2x1x16xf32> to vector<2x16xf32>
    %123 = arith.subf %122, %117 : vector<2x16xf32>
    %cst_50 = arith.constant 5.000000e-01 : f32
    %124 = vector.broadcast %cst_50 : f32 to vector<2x16xf32>
    %125 = arith.mulf %123, %124 : vector<2x16xf32>
    %126 = arith.addf %117, %125 : vector<2x16xf32>
    %cst_51 = arith.constant 5.000000e-01 : f32
    %127 = vector.broadcast %cst_51 : f32 to vector<2x16xf32>
    %128 = arith.cmpf oge, %126, %127 : vector<2x16xf32>
    %129 = arith.extui %128 : vector<2x16xi1> to vector<2x16xi32>
    %130 = arith.sitofp %129 : vector<2x16xi32> to vector<2x16xf32>
    %c0_52 = arith.constant 0 : index
    %c3_53 = arith.constant 3 : index
    %c0_54 = arith.constant 0 : index
    %131 = vector.load %arg5[%c0_52, %c3_53, %c0_54] : memref<2x4x16xf32, #tpu.memory_space<vmem>>, vector<2x1x16xf32>
    %132 = vector.shape_cast %131 : vector<2x1x16xf32> to vector<2x16xf32>
    %133 = vector.shape_cast %130 : vector<2x16xf32> to vector<2x1x16xf32>
    tpu.vector_store %arg5[%c0_52, %c3_53, %c0_54], %133 {strides = array<i32>} : memref<2x4x16xf32, #tpu.memory_space<vmem>>, vector<2x1x16xf32>,
    return
  }
  func.func @transform_0(%arg0: i32) -> (i32, i32, i32) {
    %c0_i32 = arith.constant 0 : i32
    %c0_i32_0 = arith.constant 0 : i32
    %c0_i32_1 = arith.constant 0 : i32
    return %arg0, %c0_i32, %c0_i32_0 : i32, i32, i32
  }
  func.func @transform_1(%arg0: i32) -> (i32, i32) {
    %c0_i32 = arith.constant 0 : i32
    %c0_i32_0 = arith.constant 0 : i32
    %c0_i32_1 = arith.constant 0 : i32
    return %c0_i32, %c0_i32_0 : i32, i32
  }
  func.func @transform_2(%arg0: i32) -> (i32, i32) {
    %c0_i32 = arith.constant 0 : i32
    %c0_i32_0 = arith.constant 0 : i32
    %c0_i32_1 = arith.constant 0 : i32
    return %c0_i32, %c0_i32_0 : i32, i32
  }
  func.func @transform_3(%arg0: i32) -> (i32, i32, i32) {
    %c0_i32 = arith.constant 0 : i32
    %c0_i32_0 = arith.constant 0 : i32
    %c0_i32_1 = arith.constant 0 : i32
    return %arg0, %c0_i32, %c0_i32_0 : i32, i32, i32
  }
  func.func @transform_4(%arg0: i32) -> (i32, i32, i32) {
    %c0_i32 = arith.constant 0 : i32
    %c0_i32_0 = arith.constant 0 : i32
    %c0_i32_1 = arith.constant 0 : i32
    return %arg0, %c0_i32, %c0_i32_0 : i32, i32, i32
  }
}

</mosaic_0001>

<bundles_post_ra>
// kernel: tpu_custom_call.1
= control target key start
LH: loop header
LB: loop body
LE: loop exit
PB: predicated region body
PF: predicated region fallthrough
CT: control target
= control target key end

     0   :  { %10 = vsyncpa [#allocation3], 0  ;;  %s568_s0 = inlined_call_operand.vmem [shape: f32[2,4,64], index: 0, kind: input, shape index: {}]   ;;  %s569_s1 = inlined_call_operand.vmem [shape: f32[64,32], index: 1, kind: input, shape index: {}]   ;;  %s570_s2 = inlined_call_operand.vmem [shape: f32[32,16], index: 2, kind: input, shape index: {}]   ;;  %s571_s3 = inlined_call_operand.hbm [shape: f32[2,4,32], index: 3, kind: output, shape index: {0}]   ;;  %s572_s4 = inlined_call_operand.hbm [shape: f32[2,4,16], index: 4, kind: output, shape index: {1}]  }
   0x1   :  { %v27_v0 = vld [vmem:[%s569_s1 + $0x38] sm:$0xff]  ;;  %v26_v1 = vld [vmem:[%s569_s1 + $0x30] sm:$0xff]  ;;  %v25_v2 = vld [vmem:[%s569_s1 + $0x28] sm:$0xff] }
   0x2   :  { %45 = vmatpush.msra.mxu0 %v27_v0  ;;  %v18_v3 = vld [vmem:[%s568_s0] sm:$0xf]  ;;  %v19_v4 = vld [vmem:[%s568_s0 + $0x4] sm:$0xf] }
   0x3   :  { %30 = vst [vmem:[#allocation1] ss:$2 sm:$0xff] %v18_v3 }
   0x4   :  { %46 = vmatpush.msra.mxu0 %v26_v1 }
   0x5   :  { %11 = vsyncpa [#allocation5], 0  ;;  %v24_v5 = vld [vmem:[%s569_s1 + $0x20] sm:$0xff]  ;;  %32 = vst [vmem:[#allocation1 + $0x1] ss:$2 sm:$0xff] %v19_v4  ;;  %v23_v6 = vld [vmem:[%s569_s1 + $0x18] sm:$0xff] }
   0x6   :  { %47 = vmatpush.msra.mxu0 %v25_v2  ;;  %v22_v7 = vld [vmem:[%s569_s1 + $0x10] sm:$0xff]  ;;  %v21_v8 = vld [vmem:[%s569_s1 + $0x8] sm:$0xff]  ;;  %v20_v9 = vld [vmem:[%s569_s1] sm:$0xff]  ;;  %vm34_vm0 = vcmask 523264   ;;  %vm74_vm1 = vcmask 253952   ;;  %v439_v15 = vmov 0.0  }
   0x7   :  { %v174_v37 = vld [vmem:[%s570_s2 + $0x18] sm:$0xff]  ;;  %v173_v38 = vld [vmem:[%s570_s2 + $0x10] sm:$0xff]  ;;  %v172_v41 = vld [vmem:[%s570_s2 + $0x8] sm:$0xff]  ;;  %vm181_vm10 = vcmask 261120   ;;  %s322_s18 = sshll.u32 %s571_s3, 4  ;;  %s441_s19 = smov 64   ;;  %s323_s18 = int_to_ptr.hbm [resolvable:$true] %s322_s18 }
   0x8   :  { %48 = vmatpush.msra.mxu0 %v24_v5  ;;  %196 = vmatpush.msra.mxu1 %v174_v37  ;;  %v171_v44 = vld [vmem:[%s570_s2] sm:$0xff]  ;;  %s440_s2 = smov [#allocation2]   ;;  %s442_s20 = smov 4   ;;  %vm221_vm11 = vcmask 122880  }
   0x9   :  { %s320_s15 = sshll.u32 %s440_s2, 4  ;;  %s443_s3 = smov [#allocation4]   ;;  %s321_s15 = int_to_ptr.vmem [resolvable:$true] %s320_s15 }
   0xa   :  { %49 = vmatpush.msra.mxu0 %v23_v6  ;;  %197 = vmatpush.msra.mxu1 %v173_v38  ;;  %s333_s21 = sshll.u32 %s443_s3, 4  ;;  %s335_s24 = sshll.u32 %s572_s4, 4  ;;  %s334_s21 = int_to_ptr.vmem [resolvable:$true] %s333_s21  ;;  %s336_s24 = int_to_ptr.hbm [resolvable:$true] %s335_s24 }
   0xc   :  { %50 = vmatpush.msra.mxu0 %v22_v7  ;;  %v33_v10 = vld.sshfl [vmem:[#allocation1] sm:$0xff pattern:$0x75316420]  ;;  %198 = vmatpush.msra.mxu1 %v172_v41 }
   0xe   :  { %51 = vmatpush.msra.mxu0 %v21_v8  ;;  %199 = vmatpush.msra.mxu1 %v171_v44 }
  0x10   :  { %52 = vmatpush.msra.mxu0 %v20_v9 }
  0x11   :  { %352 = vmatmul.msk.f32.vlgmr.msra.gmra.mxu0 %vm34_vm0, %v33_v10 }
  0x8e   :  { %v499_v11 = vpop.f32.mrf.mxu0 }
  0x8f   :  { %v502_v12 = vrot.slane %v499_v11, 4  ;;  %v60_v13 = vmul.f32 0.5, %v499_v11 }
  0x91   :  { %v61_v14 = vmul.f32 0.5, %v502_v12  ;;  %vm64_vm2 = vcmp.ge.f32.partialorder %v60_v13, 0.5 }
  0x92   :  { %v353_v16 = vsel %vm64_vm2, 1.0, %v439_v15 }
  0x93   :  { %vm65_vm3 = vcmp.ge.f32.partialorder %v61_v14, 0.5  ;;  %v70_v17 = vsub.f32 1.0, %v353_v16  ;;  %75 = vst.msk [vmem:[#allocation2] sm:$0x1] %vm74_vm1, %v353_v16 }
  0x94   :  { %v354_v18 = vsel %vm65_vm3, 1.0, %v439_v15 }
  0x95   :  { %v71_v19 = vsub.f32 1.0, %v354_v18  ;;  %v72_v20 = vmul.f32 %v70_v17, %v60_v13  ;;  %76 = vst.msk [vmem:[#allocation2 + $0x4] sm:$0x1] %vm74_vm1, %v354_v18 }
  0x97   :  { %v73_v21 = vmul.f32 %v71_v19, %v61_v14  ;;  %v79_v22 = vrot.slane %v72_v20, 7 }
  0x99   :  { %v80_v23 = vrot.slane %v73_v21, 7  ;;  %v83_v24 = vsub.f32 %v499_v11, %v79_v22 }
  0x9b   :  { %v84_v25 = vsub.f32 %v502_v12, %v80_v23  ;;  %v85_v26 = vmul.f32 0.5, %v83_v24 }
  0x9d   :  { %v86_v27 = vmul.f32 0.5, %v84_v25  ;;  %v355_v28 = vrot.slane %v85_v26, 9 }
  0x9f   :  { %v356_v29 = vrot.slane %v86_v27, 9  ;;  %v95_v30 = vadd.f32 %v355_v28, %v72_v20 }
  0xa1   :  { %v96_v31 = vadd.f32 %v356_v29, %v73_v21  ;;  %vm97_vm4 = vcmp.ge.f32.partialorder %v95_v30, 0.5 }
  0xa2   :  { %v357_v32 = vsel %vm97_vm4, 1.0, %v439_v15 }
  0xa3   :  { %vm98_vm5 = vcmp.ge.f32.partialorder %v96_v31, 0.5  ;;  %v103_v33 = vsub.f32 1.0, %v357_v32  ;;  %107 = vst.msk [vmem:[#allocation2 + $0x1] sm:$0x1] %vm74_vm1, %v357_v32 }
  0xa4   :  { %v358_v34 = vsel %vm98_vm5, 1.0, %v439_v15 }
  0xa5   :  { %v104_v35 = vsub.f32 1.0, %v358_v34  ;;  %v105_v36 = vmul.f32 %v103_v33, %v95_v30  ;;  %108 = vst.msk [vmem:[#allocation2 + $0x5] sm:$0x1] %vm74_vm1, %v358_v34 }
  0xa7   :  { %v106_v39 = vmul.f32 %v104_v35, %v96_v31  ;;  %v111_v40 = vrot.slane %v105_v36, 6 }
  0xa9   :  { %v112_v42 = vrot.slane %v106_v39, 6  ;;  %v115_v43 = vsub.f32 %v499_v11, %v111_v40 }
  0xab   :  { %v116_v45 = vsub.f32 %v502_v12, %v112_v42  ;;  %v117_v46 = vmul.f32 0.5, %v115_v43 }
  0xad   :  { %v118_v47 = vmul.f32 0.5, %v116_v45  ;;  %v359_v48 = vrot.slane %v117_v46, 10 }
  0xaf   :  { %v360_v49 = vrot.slane %v118_v47, 10  ;;  %v127_v50 = vadd.f32 %v359_v48, %v105_v36 }
  0xb1   :  { %v128_v51 = vadd.f32 %v360_v49, %v106_v39  ;;  %vm129_vm6 = vcmp.ge.f32.partialorder %v127_v50, 0.5 }
  0xb2   :  { %v361_v52 = vsel %vm129_vm6, 1.0, %v439_v15 }
  0xb3   :  { %vm130_vm7 = vcmp.ge.f32.partialorder %v128_v51, 0.5  ;;  %v135_v53 = vsub.f32 1.0, %v361_v52  ;;  %139 = vst.msk [vmem:[#allocation2 + $0x2] sm:$0x1] %vm74_vm1, %v361_v52 }
  0xb4   :  { %v362_v54 = vsel %vm130_vm7, 1.0, %v439_v15 }
  0xb5   :  { %v136_v55 = vsub.f32 1.0, %v362_v54  ;;  %v137_v56 = vmul.f32 %v135_v53, %v127_v50  ;;  %140 = vst.msk [vmem:[#allocation2 + $0x6] sm:$0x1] %vm74_vm1, %v362_v54 }
  0xb7   :  { %v138_v57 = vmul.f32 %v136_v55, %v128_v51  ;;  %v143_v58 = vrot.slane %v137_v56, 5 }
  0xb9   :  { %v144_v59 = vrot.slane %v138_v57, 5  ;;  %v147_v60 = vsub.f32 %v499_v11, %v143_v58 }
  0xbb   :  { %v148_v61 = vsub.f32 %v502_v12, %v144_v59  ;;  %v149_v62 = vmul.f32 0.5, %v147_v60 }
  0xbd   :  { %v150_v63 = vmul.f32 0.5, %v148_v61  ;;  %v363_v0 = vrot.slane %v149_v62, 11 }
  0xbf   :  { %v364_v1 = vrot.slane %v150_v63, 11  ;;  %v159_v2 = vadd.f32 %v363_v0, %v137_v56 }
  0xc1   :  { %v160_v3 = vadd.f32 %v364_v1, %v138_v57  ;;  %vm161_vm8 = vcmp.ge.f32.partialorder %v159_v2, 0.5 }
  0xc2   :  { %v365_v4 = vsel %vm161_vm8, 1.0, %v439_v15 }
  0xc3   :  { %vm162_vm9 = vcmp.ge.f32.partialorder %v160_v3, 0.5  ;;  %167 = vst.msk [vmem:[#allocation2 + $0x3] sm:$0x1] %vm74_vm1, %v365_v4 }
  0xc4   :  { %v366_v5 = vsel %vm162_vm9, 1.0, %v439_v15 }
  0xc5   :  { %168 = vst.msk [vmem:[#allocation2 + $0x7] sm:$0x1] %vm74_vm1, %v366_v5 }
  0xc6   :  { %328 = dma.vmem_to_hbm [thread:$0]  %s321_s15, 128, %s323_s18, [#allocation3], %s441_s19, %s441_s19, %s442_s20  }
  0xca   :  { %v169_v6 = vld [vmem:[#allocation2] sm:$0xf] }
  0xcb   :  { %177 = vst [vmem:[#allocation1] ss:$2 sm:$0xff] %v169_v6 }
  0xcc   :  { %v170_v7 = vld [vmem:[#allocation2 + $0x4] sm:$0xf] }
  0xcd   :  { %179 = vst [vmem:[#allocation1 + $0x1] ss:$2 sm:$0xff] %v170_v7 }
  0xd4   :  { %v180_v8 = vld.sshfl [vmem:[#allocation1] sm:$0xff pattern:$0x75316420] }
  0xd5   :  { %367 = vmatmul.msk.f32.vlgmr.msra.gmra.mxu1 %vm181_vm10, %v180_v8 }
 0x152   :  { %v201_v9 = vpop.f32.mrf.mxu1 }
 0x153   :  { %v205_v10 = vrot.slane %v201_v9, 4  ;;  %v207_v11 = vmul.f32 0.5, %v201_v9 }
 0x155   :  { %v208_v12 = vmul.f32 0.5, %v205_v10  ;;  %vm211_vm12 = vcmp.ge.f32.partialorder %v207_v11, 0.5 }
 0x156   :  { %v368_v13 = vsel %vm211_vm12, 1.0, %v439_v15 }
 0x157   :  { %vm212_vm13 = vcmp.ge.f32.partialorder %v208_v12, 0.5  ;;  %v217_v14 = vsub.f32 1.0, %v368_v13  ;;  %222 = vst.msk [vmem:[#allocation4] sm:$0x1] %vm221_vm11, %v368_v13 }
 0x158   :  { %v369_v16 = vsel %vm212_vm13, 1.0, %v439_v15 }
 0x159   :  { %v218_v17 = vsub.f32 1.0, %v369_v16  ;;  %v219_v18 = vmul.f32 %v217_v14, %v207_v11  ;;  %223 = vst.msk [vmem:[#allocation4 + $0x4] sm:$0x1] %vm221_vm11, %v369_v16 }
 0x15b   :  { %v220_v19 = vmul.f32 %v218_v17, %v208_v12  ;;  %v226_v20 = vrot.slane %v219_v18, 7 }
 0x15d   :  { %v227_v21 = vrot.slane %v220_v19, 7  ;;  %v230_v22 = vsub.f32 %v201_v9, %v226_v20 }
 0x15f   :  { %v231_v23 = vsub.f32 %v205_v10, %v227_v21  ;;  %v232_v24 = vmul.f32 0.5, %v230_v22 }
 0x161   :  { %v233_v25 = vmul.f32 0.5, %v231_v23  ;;  %v370_v26 = vrot.slane %v232_v24, 9 }
 0x163   :  { %v371_v27 = vrot.slane %v233_v25, 9  ;;  %v242_v28 = vadd.f32 %v370_v26, %v219_v18 }
 0x165   :  { %v243_v29 = vadd.f32 %v371_v27, %v220_v19  ;;  %vm244_vm14 = vcmp.ge.f32.partialorder %v242_v28, 0.5 }
 0x166   :  { %v372_v30 = vsel %vm244_vm14, 1.0, %v439_v15 }
 0x167   :  { %vm245_vm15 = vcmp.ge.f32.partialorder %v243_v29, 0.5  ;;  %v250_v31 = vsub.f32 1.0, %v372_v30  ;;  %254 = vst.msk [vmem:[#allocation4 + $0x1] sm:$0x1] %vm221_vm11, %v372_v30 }
 0x168   :  { %v373_v32 = vsel %vm245_vm15, 1.0, %v439_v15 }
 0x169   :  { %v251_v33 = vsub.f32 1.0, %v373_v32  ;;  %v252_v34 = vmul.f32 %v250_v31, %v242_v28  ;;  %255 = vst.msk [vmem:[#allocation4 + $0x5] sm:$0x1] %vm221_vm11, %v373_v32 }
 0x16b   :  { %v253_v35 = vmul.f32 %v251_v33, %v243_v29  ;;  %v258_v36 = vrot.slane %v252_v34, 6 }
 0x16d   :  { %v259_v37 = vrot.slane %v253_v35, 6  ;;  %v262_v38 = vsub.f32 %v201_v9, %v258_v36 }
 0x16f   :  { %v263_v39 = vsub.f32 %v205_v10, %v259_v37  ;;  %v264_v40 = vmul.f32 0.5, %v262_v38 }
 0x171   :  { %v265_v41 = vmul.f32 0.5, %v263_v39  ;;  %v374_v42 = vrot.slane %v264_v40, 10 }
 0x173   :  { %v375_v43 = vrot.slane %v265_v41, 10  ;;  %v274_v44 = vadd.f32 %v374_v42, %v252_v34 }
 0x175   :  { %v275_v45 = vadd.f32 %v375_v43, %v253_v35  ;;  %vm276_vm0 = vcmp.ge.f32.partialorder %v274_v44, 0.5 }
 0x176   :  { %v376_v46 = vsel %vm276_vm0, 1.0, %v439_v15 }
 0x177   :  { %vm277_vm1 = vcmp.ge.f32.partialorder %v275_v45, 0.5  ;;  %v282_v47 = vsub.f32 1.0, %v376_v46  ;;  %286 = vst.msk [vmem:[#allocation4 + $0x2] sm:$0x1] %vm221_vm11, %v376_v46 }
 0x178   :  { %v377_v48 = vsel %vm277_vm1, 1.0, %v439_v15 }
 0x179   :  { %v283_v49 = vsub.f32 1.0, %v377_v48  ;;  %v284_v50 = vmul.f32 %v282_v47, %v274_v44  ;;  %287 = vst.msk [vmem:[#allocation4 + $0x6] sm:$0x1] %vm221_vm11, %v377_v48 }
 0x17b   :  { %v285_v51 = vmul.f32 %v283_v49, %v275_v45  ;;  %v290_v52 = vrot.slane %v284_v50, 5 }
 0x17d   :  { %v291_v53 = vrot.slane %v285_v51, 5  ;;  %v294_v54 = vsub.f32 %v201_v9, %v290_v52 }
 0x17f   :  { %v295_v55 = vsub.f32 %v205_v10, %v291_v53  ;;  %v296_v56 = vmul.f32 0.5, %v294_v54 }
 0x181   :  { %v297_v57 = vmul.f32 0.5, %v295_v55  ;;  %v378_v58 = vrot.slane %v296_v56, 11 }
 0x183   :  { %v379_v59 = vrot.slane %v297_v57, 11  ;;  %v306_v60 = vadd.f32 %v378_v58, %v284_v50 }
 0x185   :  { %v307_v61 = vadd.f32 %v379_v59, %v285_v51  ;;  %vm308_vm2 = vcmp.ge.f32.partialorder %v306_v60, 0.5 }
 0x186   :  { %v380_v62 = vsel %vm308_vm2, 1.0, %v439_v15 }
 0x187   :  { %vm309_vm3 = vcmp.ge.f32.partialorder %v307_v61, 0.5  ;;  %314 = vst.msk [vmem:[#allocation4 + $0x3] sm:$0x1] %vm221_vm11, %v380_v62 }
 0x188   :  { %v381_v63 = vsel %vm309_vm3, 1.0, %v439_v15 }
 0x189   :  { %315 = vst.msk [vmem:[#allocation4 + $0x7] sm:$0x1] %vm221_vm11, %v381_v63 }
 0x18a   :  { %341 = dma.vmem_to_hbm [thread:$0]  %s334_s21, 128, %s336_s24, [#allocation5], %s441_s19, %s441_s19, %s442_s20  }
 0x18b   :  { %435 = dma.done.wait [#allocation3], 128  }
 0x18c   :  { %436 = vsyncadd [#allocation3], 4294967168 }
 0x18d   :  { %437 = dma.done.wait [#allocation5], 128  }
 0x18e   :  { %438 = vsyncadd [#allocation5], 4294967168 }
 0x18f   :  { %350 = vsyncpa [#allocation3], 1 }
 0x190   :  { %351 = vsyncpa [#allocation5], 1 }

</bundles_post_ra>
